<compile_context>
chip_gen: v7x
topology: tpu7x:2x2x1
jax: 0.10.0
libtpu: 0.0.40
codegen_flags: <defaults>
</compile_context>

<pallas_src>
import functools

import numpy as np
import jax
import jax.numpy as jnp
from jax.experimental import pallas as pl
from jax.experimental.pallas import tpu as pltpu

_LOG2 = 0.6931471805599453
_HALF_LOG_2PI = 0.9189385332046727  # 0.5 * log(2 * pi)


def _softplus(x):
    # numerically stable log(1 + exp(x))  (== catalyst's log1p_exp)
    return jnp.maximum(x, 0.0) + jnp.log(1.0 + jnp.exp(-jnp.abs(x)))


def realnvp_kernel(s_ref,                 # [B, 2A]   state embedding
                   wpre_ref,              # packed prenet weights   (lane width A)
                   wnet1_ref,             # packed coupling1 net weights + biases (lane width c2)
                   wnet2_ref,             # packed coupling2 net weights + biases (lane width c1)
                   out_ref,               # [B, A+1]  = [action | log_pi]
                   *, A, c1, c2, pre_off, net1_off, net2_off):
    E = 2 * A
    ot1p, os1p, ot2p, os2p, ot2a, os2a = pre_off
    owt1, ows1, obt1, obs1 = net1_off
    owt2, ows2, obt2, obs2 = net2_off

    def dot(a, b):
        return jnp.dot(a, b, preferred_element_type=jnp.float32)

    s_emb = s_ref[...]                                            # [B, 2A]

    # ---- coupling1 (parity='odd'); deterministic z = mu = 0 -----------------
    # x = [state_embedding | action_copy] with action_copy == 0, so only the
    # state-row block of each prenet weight contributes (bit-exact).
    pre_t1 = jnp.maximum(dot(s_emb, wpre_ref[ot1p:ot1p + E, :]), 0.0)
    pre_s1 = jnp.maximum(dot(s_emb, wpre_ref[os1p:os1p + E, :]), 0.0)
    t1 = dot(pre_t1, wnet1_ref[owt1:owt1 + A, :]) + wnet1_ref[obt1:obt1 + 1, :]   # [B, c2]
    s1 = dot(pre_s1, wnet1_ref[ows1:ows1 + A, :]) + wnet1_ref[obs1:obs1 + 1, :]   # [B, c2]
    # out_transform1 = t1 + action_transform * exp(s1) = t1  (action_transform == 0)
    # action after coupling1 = [0_{c1} | t1]

    # ---- coupling2 (parity='even'); action_copy = t1, action_transform = 0 --
    pre_t2 = jnp.maximum(dot(s_emb, wpre_ref[ot2p:ot2p + E, :])
                         + dot(t1, wpre_ref[ot2a:ot2a + c2, :]), 0.0)
    pre_s2 = jnp.maximum(dot(s_emb, wpre_ref[os2p:os2p + E, :])
                         + dot(t1, wpre_ref[os2a:os2a + c2, :]), 0.0)
    t2 = dot(pre_t2, wnet2_ref[owt2:owt2 + A, :]) + wnet2_ref[obt2:obt2 + 1, :]   # [B, c1]
    s2 = dot(pre_s2, wnet2_ref[ows2:ows2 + A, :]) + wnet2_ref[obs2:obs2 + 1, :]   # [B, c1]
    # out_transform2 = t2 ; pre-squash action = [t2 | t1]

    # ---- log_pi: normal_log_prob(0, 1, 0) - sum(s1) - sum(s2) ----------------
    log_pi = (jnp.float32(-float(A) * _HALF_LOG_2PI)
              - jnp.sum(s1, axis=1, keepdims=True)
              - jnp.sum(s2, axis=1, keepdims=True))               # [B, 1]

    # ---- SquashingLayer (Tanh): ldj summed over both halves, no concat -------
    ldj = (jnp.sum(2.0 * (_LOG2 + t2 - _softplus(2.0 * t2)), axis=1, keepdims=True)
           + jnp.sum(2.0 * (_LOG2 + t1 - _softplus(2.0 * t1)), axis=1, keepdims=True))
    log_pi = log_pi - ldj

    # ---- single lane-padded output: [action | log_pi] -----------------------
    out_ref[:, 0:c1] = jnp.tanh(t2)
    out_ref[:, c1:A] = jnp.tanh(t1)
    out_ref[:, A:A + 1] = log_pi


def _pack_rows(blocks):
    """Row-stack 2-D blocks, padding each block to a multiple of 8 rows so that
    every in-kernel static ref slice starts on a sublane-aligned offset.
    Returns (packed_array, per-block row offsets)."""
    padded, offsets, off = [], [], 0
    for blk in blocks:
        r, c = blk.shape
        rp = -(-r // 8) * 8
        offsets.append(off)
        if rp > r:
            blk = jnp.concatenate([blk, jnp.zeros((rp - r, c), blk.dtype)], axis=0)
        padded.append(blk)
        off += rp
    return jnp.concatenate(padded, axis=0), offsets


def realnvp_forward(state_emb, params):
    """state_emb: [B, 2*A] float32. Returns (action [B, A], log_pi [B])."""
    (w_t1_pre, w_t1, b_t1, w_s1_pre, w_s1, b_s1,
     w_t2_pre, w_t2, b_t2, w_s2_pre, w_s2, b_s2) = params
    B, E = state_emb.shape
    A = w_t1.shape[0]
    c1 = A // 2
    c2 = A - c1
    assert E == 2 * A

    # Prenet weights: split into state rows / action-copy rows so the kernel
    # never concatenates along lanes. Coupling1's action-copy input is
    # identically zero on the deterministic path, so its action rows are
    # dropped entirely (bit-exact).
    wpre, pre_off = _pack_rows([
        w_t1_pre[:2 * A], w_s1_pre[:2 * A],
        w_t2_pre[:2 * A], w_s2_pre[:2 * A],
        w_t2_pre[2 * A:], w_s2_pre[2 * A:],
    ])
    wnet1, net1_off = _pack_rows([w_t1, w_s1, b_t1[None, :], b_s1[None, :]])
    wnet2, net2_off = _pack_rows([w_t2, w_s2, b_t2[None, :], b_s2[None, :]])

    vmem = pl.BlockSpec(memory_space=pltpu.MemorySpace.VMEM)
    out = pl.pallas_call(
        functools.partial(realnvp_kernel, A=A, c1=c1, c2=c2,
                          pre_off=tuple(pre_off),
                          net1_off=tuple(net1_off),
                          net2_off=tuple(net2_off)),
        out_shape=jax.ShapeDtypeStruct((B, A + 1), jnp.float32),
        in_specs=[vmem] * 4,
        out_specs=vmem,
    )(state_emb, wpre, wnet1, wnet2)
    return out[:, :A], out[:, A]


def realnvp_reference(state_emb, params):
    """Pure-JAX reference mirroring the PyTorch forward (deterministic=True)."""
    (w_t1_pre, w_t1, b_t1, w_s1_pre, w_s1, b_s1,
     w_t2_pre, w_t2, b_t2, w_s2_pre, w_s2, b_s2) = params
    B = state_emb.shape[0]
    A = w_t1.shape[0]
    c1 = A // 2
    c2 = A - c1

    mu = jnp.zeros((B, A), jnp.float32)
    sigma = jnp.ones_like(mu)
    z = mu                                              # deterministic
    log_pi = jnp.sum(-jnp.log(sigma) - 0.5 * jnp.log(2.0 * jnp.pi)
                     - 0.5 * ((z - mu) / sigma) ** 2, axis=1)

    # coupling1 (parity='odd'); prenets have no bias (bias=False)
    a_copy, a_trans = z[:, :c1], z[:, c1:]
    x = jnp.concatenate([state_emb, a_copy], axis=1)
    t = jax.nn.relu(x @ w_t1_pre) @ w_t1 + b_t1
    s = jax.nn.relu(x @ w_s1_pre) @ w_s1 + b_s1
    out_t = t + a_trans * jnp.exp(s)
    z = jnp.concatenate([a_copy, out_t], axis=1)
    log_pi = log_pi - jnp.sum(s, axis=1)

    # coupling2 (parity='even')
    a_copy, a_trans = z[:, -c2:], z[:, :-c2]
    x = jnp.concatenate([state_emb, a_copy], axis=1)
    t = jax.nn.relu(x @ w_t2_pre) @ w_t2 + b_t2
    s = jax.nn.relu(x @ w_s2_pre) @ w_s2 + b_s2
    out_t = t + a_trans * jnp.exp(s)
    z = jnp.concatenate([out_t, a_copy], axis=1)
    log_pi = log_pi - jnp.sum(s, axis=1)

    # squashing (Tanh)
    ldj = jnp.sum(2.0 * (jnp.log(2.0) + z - jax.nn.softplus(2.0 * z)), axis=-1)
    action = jnp.tanh(z)
    log_pi = log_pi - ldj
    return action, log_pi


if __name__ == "__main__":
    B, A = 4, 8                      # batch, action_size  (state embedding = 2*A)
    c1, c2 = A // 2, A - A // 2

    key = jax.random.PRNGKey(0)
    ks = jax.random.split(key, 13)
    state_emb = jax.random.normal(ks[0], (B, 2 * A), dtype=jnp.float32)

    def w(k, shape, scale=0.3):
        return scale * jax.random.normal(k, shape, dtype=jnp.float32)

    # Weights stored [in, out] (transposed vs. torch.nn.Linear.weight).
    w_t1_pre = w(ks[1], (2 * A + c1, A))                       # translation_prenet (no bias)
    w_t1 = w(ks[2], (A, A - c1))
    b_t1 = 0.05 * jax.random.normal(ks[3], (A - c1,), dtype=jnp.float32)
    w_s1_pre = w(ks[4], (2 * A + c1, A))                       # scale_prenet (no bias)
    w_s1 = w(ks[5], (A, A - c1))
    b_s1 = 0.05 * jax.random.normal(ks[6], (A - c1,), dtype=jnp.float32)
    w_t2_pre = w(ks[7], (2 * A + c2, A))
    w_t2 = w(ks[8], (A, A - c2))
    b_t2 = 0.05 * jax.random.normal(ks[9], (A - c2,), dtype=jnp.float32)
    w_s2_pre = w(ks[10], (2 * A + c2, A))
    w_s2 = w(ks[11], (A, A - c2))
    b_s2 = 0.05 * jax.random.normal(ks[12], (A - c2,), dtype=jnp.float32)

    params = (w_t1_pre, w_t1, b_t1, w_s1_pre, w_s1, b_s1,
              w_t2_pre, w_t2, b_t2, w_s2_pre, w_s2, b_s2)

    action, log_pi = realnvp_forward(state_emb, params)
    jax.block_until_ready((action, log_pi))

    ref_action, ref_log_pi = realnvp_reference(state_emb, params)
    np.testing.assert_allclose(np.asarray(action), np.asarray(ref_action),
                               rtol=1e-5, atol=1e-5)
    np.testing.assert_allclose(np.asarray(log_pi), np.asarray(ref_log_pi),
                               rtol=1e-5, atol=1e-5)

    print("KERNEL_OK")
</pallas_src>

<mosaic_0001>
module attributes {stable_mosaic.version = 11 : i64} {
  func.func @realnvp_kernel(%arg0: memref<4x16xf32, #tpu.memory_space<vmem>>, %arg1: memref<80x8xf32, #tpu.memory_space<vmem>>, %arg2: memref<32x4xf32, #tpu.memory_space<vmem>>, %arg3: memref<32x4xf32, #tpu.memory_space<vmem>>, %arg4: memref<4x9xf32, #tpu.memory_space<vmem>>) attributes {dimension_semantics = [], scalar_prefetch = 0 : i64, scratch_operands = 0 : i64, tpu.core_type = #tpu.core_type<tc>} {
    %c0 = arith.constant 0 : index
    %c0_0 = arith.constant 0 : index
    %0 = vector.load %arg0[%c0, %c0_0] : memref<4x16xf32, #tpu.memory_space<vmem>>, vector<4x16xf32>
    %c0_1 = arith.constant 0 : index
    %c0_2 = arith.constant 0 : index
    %1 = vector.load %arg1[%c0_1, %c0_2] : memref<80x8xf32, #tpu.memory_space<vmem>>, vector<16x8xf32>
    %cst = arith.constant dense<0.000000e+00> : vector<4x8xf32>
    %2 = tpu.matmul %0, %1, %cst {dimension_numbers = #tpu.dot_dimension_numbers<[1], [0], [0], [1], [0, 0, 1, 1], [], []>} : vector<4x16xf32>, vector<16x8xf32>, vector<4x8xf32> -> vector<4x8xf32>
    %cst_3 = arith.constant 0.000000e+00 : f32
    %3 = vector.broadcast %cst_3 : f32 to vector<4x8xf32>
    %4 = arith.maximumf %2, %3 : vector<4x8xf32>
    %c16 = arith.constant 16 : index
    %c0_4 = arith.constant 0 : index
    %5 = vector.load %arg1[%c16, %c0_4] : memref<80x8xf32, #tpu.memory_space<vmem>>, vector<16x8xf32>
    %cst_5 = arith.constant dense<0.000000e+00> : vector<4x8xf32>
    %6 = tpu.matmul %0, %5, %cst_5 {dimension_numbers = #tpu.dot_dimension_numbers<[1], [0], [0], [1], [0, 0, 1, 1], [], []>} : vector<4x16xf32>, vector<16x8xf32>, vector<4x8xf32> -> vector<4x8xf32>
    %cst_6 = arith.constant 0.000000e+00 : f32
    %7 = vector.broadcast %cst_6 : f32 to vector<4x8xf32>
    %8 = arith.maximumf %6, %7 : vector<4x8xf32>
    %c0_7 = arith.constant 0 : index
    %c0_8 = arith.constant 0 : index
    %9 = vector.load %arg2[%c0_7, %c0_8] : memref<32x4xf32, #tpu.memory_space<vmem>>, vector<8x4xf32>
    %cst_9 = arith.constant dense<0.000000e+00> : vector<4x4xf32>
    %10 = tpu.matmul %4, %9, %cst_9 {dimension_numbers = #tpu.dot_dimension_numbers<[1], [0], [0], [1], [0, 0, 1, 1], [], []>} : vector<4x8xf32>, vector<8x4xf32>, vector<4x4xf32> -> vector<4x4xf32>
    %c16_10 = arith.constant 16 : index
    %c0_11 = arith.constant 0 : index
    %11 = vector.load %arg2[%c16_10, %c0_11] : memref<32x4xf32, #tpu.memory_space<vmem>>, vector<1x4xf32>
    %12 = vector.broadcast %11 : vector<1x4xf32> to vector<4x4xf32>
    %13 = arith.addf %10, %12 : vector<4x4xf32>
    %c8 = arith.constant 8 : index
    %c0_12 = arith.constant 0 : index
    %14 = vector.load %arg2[%c8, %c0_12] : memref<32x4xf32, #tpu.memory_space<vmem>>, vector<8x4xf32>
    %cst_13 = arith.constant dense<0.000000e+00> : vector<4x4xf32>
    %15 = tpu.matmul %8, %14, %cst_13 {dimension_numbers = #tpu.dot_dimension_numbers<[1], [0], [0], [1], [0, 0, 1, 1], [], []>} : vector<4x8xf32>, vector<8x4xf32>, vector<4x4xf32> -> vector<4x4xf32>
    %c24 = arith.constant 24 : index
    %c0_14 = arith.constant 0 : index
    %16 = vector.load %arg2[%c24, %c0_14] : memref<32x4xf32, #tpu.memory_space<vmem>>, vector<1x4xf32>
    %17 = vector.broadcast %16 : vector<1x4xf32> to vector<4x4xf32>
    %18 = arith.addf %15, %17 : vector<4x4xf32>
    %c32 = arith.constant 32 : index
    %c0_15 = arith.constant 0 : index
    %19 = vector.load %arg1[%c32, %c0_15] : memref<80x8xf32, #tpu.memory_space<vmem>>, vector<16x8xf32>
    %cst_16 = arith.constant dense<0.000000e+00> : vector<4x8xf32>
    %20 = tpu.matmul %0, %19, %cst_16 {dimension_numbers = #tpu.dot_dimension_numbers<[1], [0], [0], [1], [0, 0, 1, 1], [], []>} : vector<4x16xf32>, vector<16x8xf32>, vector<4x8xf32> -> vector<4x8xf32>
    %c64 = arith.constant 64 : index
    %c0_17 = arith.constant 0 : index
    %21 = vector.load %arg1[%c64, %c0_17] : memref<80x8xf32, #tpu.memory_space<vmem>>, vector<4x8xf32>
    %cst_18 = arith.constant dense<0.000000e+00> : vector<4x8xf32>
    %22 = tpu.matmul %13, %21, %cst_18 {dimension_numbers = #tpu.dot_dimension_numbers<[1], [0], [0], [1], [0, 0, 1, 1], [], []>} : vector<4x4xf32>, vector<4x8xf32>, vector<4x8xf32> -> vector<4x8xf32>
    %23 = arith.addf %20, %22 : vector<4x8xf32>
    %cst_19 = arith.constant 0.000000e+00 : f32
    %24 = vector.broadcast %cst_19 : f32 to vector<4x8xf32>
    %25 = arith.maximumf %23, %24 : vector<4x8xf32>
    %c48 = arith.constant 48 : index
    %c0_20 = arith.constant 0 : index
    %26 = vector.load %arg1[%c48, %c0_20] : memref<80x8xf32, #tpu.memory_space<vmem>>, vector<16x8xf32>
    %cst_21 = arith.constant dense<0.000000e+00> : vector<4x8xf32>
    %27 = tpu.matmul %0, %26, %cst_21 {dimension_numbers = #tpu.dot_dimension_numbers<[1], [0], [0], [1], [0, 0, 1, 1], [], []>} : vector<4x16xf32>, vector<16x8xf32>, vector<4x8xf32> -> vector<4x8xf32>
    %c72 = arith.constant 72 : index
    %c0_22 = arith.constant 0 : index
    %28 = vector.load %arg1[%c72, %c0_22] : memref<80x8xf32, #tpu.memory_space<vmem>>, vector<4x8xf32>
    %cst_23 = arith.constant dense<0.000000e+00> : vector<4x8xf32>
    %29 = tpu.matmul %13, %28, %cst_23 {dimension_numbers = #tpu.dot_dimension_numbers<[1], [0], [0], [1], [0, 0, 1, 1], [], []>} : vector<4x4xf32>, vector<4x8xf32>, vector<4x8xf32> -> vector<4x8xf32>
    %30 = arith.addf %27, %29 : vector<4x8xf32>
    %cst_24 = arith.constant 0.000000e+00 : f32
    %31 = vector.broadcast %cst_24 : f32 to vector<4x8xf32>
    %32 = arith.maximumf %30, %31 : vector<4x8xf32>
    %c0_25 = arith.constant 0 : index
    %c0_26 = arith.constant 0 : index
    %33 = vector.load %arg3[%c0_25, %c0_26] : memref<32x4xf32, #tpu.memory_space<vmem>>, vector<8x4xf32>
    %cst_27 = arith.constant dense<0.000000e+00> : vector<4x4xf32>
    %34 = tpu.matmul %25, %33, %cst_27 {dimension_numbers = #tpu.dot_dimension_numbers<[1], [0], [0], [1], [0, 0, 1, 1], [], []>} : vector<4x8xf32>, vector<8x4xf32>, vector<4x4xf32> -> vector<4x4xf32>
    %c16_28 = arith.constant 16 : index
    %c0_29 = arith.constant 0 : index
    %35 = vector.load %arg3[%c16_28, %c0_29] : memref<32x4xf32, #tpu.memory_space<vmem>>, vector<1x4xf32>
    %36 = vector.broadcast %35 : vector<1x4xf32> to vector<4x4xf32>
    %37 = arith.addf %34, %36 : vector<4x4xf32>
    %c8_30 = arith.constant 8 : index
    %c0_31 = arith.constant 0 : index
    %38 = vector.load %arg3[%c8_30, %c0_31] : memref<32x4xf32, #tpu.memory_space<vmem>>, vector<8x4xf32>
    %cst_32 = arith.constant dense<0.000000e+00> : vector<4x4xf32>
    %39 = tpu.matmul %32, %38, %cst_32 {dimension_numbers = #tpu.dot_dimension_numbers<[1], [0], [0], [1], [0, 0, 1, 1], [], []>} : vector<4x8xf32>, vector<8x4xf32>, vector<4x4xf32> -> vector<4x4xf32>
    %c24_33 = arith.constant 24 : index
    %c0_34 = arith.constant 0 : index
    %40 = vector.load %arg3[%c24_33, %c0_34] : memref<32x4xf32, #tpu.memory_space<vmem>>, vector<1x4xf32>
    %41 = vector.broadcast %40 : vector<1x4xf32> to vector<4x4xf32>
    %42 = arith.addf %39, %41 : vector<4x4xf32>
    %cst_35 = arith.constant dense<0.000000e+00> : vector<4xf32>
    %43 = vector.multi_reduction <add>, %18, %cst_35 [1] : vector<4x4xf32> to vector<4xf32>
    %44 = vector.shape_cast %43 : vector<4xf32> to vector<4x1xf32>
    %cst_36 = arith.constant -7.35150814 : f32
    %45 = vector.broadcast %cst_36 : f32 to vector<4x1xf32>
    %46 = arith.subf %45, %44 : vector<4x1xf32>
    %cst_37 = arith.constant dense<0.000000e+00> : vector<4xf32>
    %47 = vector.multi_reduction <add>, %42, %cst_37 [1] : vector<4x4xf32> to vector<4xf32>
    %48 = vector.shape_cast %47 : vector<4xf32> to vector<4x1xf32>
    %49 = arith.subf %46, %48 : vector<4x1xf32>
    %cst_38 = arith.constant 0.693147182 : f32
    %50 = vector.broadcast %cst_38 : f32 to vector<4x4xf32>
    %51 = arith.addf %50, %37 : vector<4x4xf32>
    %cst_39 = arith.constant 2.000000e+00 : f32
    %52 = vector.broadcast %cst_39 : f32 to vector<4x4xf32>
    %53 = arith.mulf %52, %37 : vector<4x4xf32>
    %cst_40 = arith.constant 0.000000e+00 : f32
    %54 = vector.broadcast %cst_40 : f32 to vector<4x4xf32>
    %55 = arith.maximumf %53, %54 : vector<4x4xf32>
    %56 = math.absf %53 : vector<4x4xf32>
    %cst_41 = arith.constant 0.000000e+00 : f32
    %57 = vector.broadcast %cst_41 : f32 to vector<4x4xf32>
    %58 = arith.subf %57, %56 : vector<4x4xf32>
    %59 = math.exp %58 : vector<4x4xf32>
    %cst_42 = arith.constant 1.000000e+00 : f32
    %60 = vector.broadcast %cst_42 : f32 to vector<4x4xf32>
    %61 = arith.addf %60, %59 : vector<4x4xf32>
    %62 = math.log %61 : vector<4x4xf32>
    %63 = arith.addf %55, %62 : vector<4x4xf32>
    %64 = arith.subf %51, %63 : vector<4x4xf32>
    %cst_43 = arith.constant 2.000000e+00 : f32
    %65 = vector.broadcast %cst_43 : f32 to vector<4x4xf32>
    %66 = arith.mulf %65, %64 : vector<4x4xf32>
    %cst_44 = arith.constant dense<0.000000e+00> : vector<4xf32>
    %67 = vector.multi_reduction <add>, %66, %cst_44 [1] : vector<4x4xf32> to vector<4xf32>
    %68 = vector.shape_cast %67 : vector<4xf32> to vector<4x1xf32>
    %cst_45 = arith.constant 0.693147182 : f32
    %69 = vector.broadcast %cst_45 : f32 to vector<4x4xf32>
    %70 = arith.addf %69, %13 : vector<4x4xf32>
    %cst_46 = arith.constant 2.000000e+00 : f32
    %71 = vector.broadcast %cst_46 : f32 to vector<4x4xf32>
    %72 = arith.mulf %71, %13 : vector<4x4xf32>
    %cst_47 = arith.constant 0.000000e+00 : f32
    %73 = vector.broadcast %cst_47 : f32 to vector<4x4xf32>
    %74 = arith.maximumf %72, %73 : vector<4x4xf32>
    %75 = math.absf %72 : vector<4x4xf32>
    %cst_48 = arith.constant 0.000000e+00 : f32
    %76 = vector.broadcast %cst_48 : f32 to vector<4x4xf32>
    %77 = arith.subf %76, %75 : vector<4x4xf32>
    %78 = math.exp %77 : vector<4x4xf32>
    %cst_49 = arith.constant 1.000000e+00 : f32
    %79 = vector.broadcast %cst_49 : f32 to vector<4x4xf32>
    %80 = arith.addf %79, %78 : vector<4x4xf32>
    %81 = math.log %80 : vector<4x4xf32>
    %82 = arith.addf %74, %81 : vector<4x4xf32>
    %83 = arith.subf %70, %82 : vector<4x4xf32>
    %cst_50 = arith.constant 2.000000e+00 : f32
    %84 = vector.broadcast %cst_50 : f32 to vector<4x4xf32>
    %85 = arith.mulf %84, %83 : vector<4x4xf32>
    %cst_51 = arith.constant dense<0.000000e+00> : vector<4xf32>
    %86 = vector.multi_reduction <add>, %85, %cst_51 [1] : vector<4x4xf32> to vector<4xf32>
    %87 = vector.shape_cast %86 : vector<4xf32> to vector<4x1xf32>
    %88 = arith.addf %68, %87 : vector<4x1xf32>
    %89 = arith.subf %49, %88 : vector<4x1xf32>
    %90 = math.tanh %37 : vector<4x4xf32>
    %c0_52 = arith.constant 0 : index
    %c0_53 = arith.constant 0 : index
    %91 = vector.load %arg4[%c0_52, %c0_53] : memref<4x9xf32, #tpu.memory_space<vmem>>, vector<4x4xf32>
    tpu.vector_store %arg4[%c0_52, %c0_53], %90 {strides = array<i32>} : memref<4x9xf32, #tpu.memory_space<vmem>>, vector<4x4xf32>,
    %92 = math.tanh %13 : vector<4x4xf32>
    %c0_54 = arith.constant 0 : index
    %c4 = arith.constant 4 : index
    %93 = vector.load %arg4[%c0_54, %c4] : memref<4x9xf32, #tpu.memory_space<vmem>>, vector<4x4xf32>
    tpu.vector_store %arg4[%c0_54, %c4], %92 {strides = array<i32>} : memref<4x9xf32, #tpu.memory_space<vmem>>, vector<4x4xf32>,
    %c0_55 = arith.constant 0 : index
    %c8_56 = arith.constant 8 : index
    %94 = vector.load %arg4[%c0_55, %c8_56] : memref<4x9xf32, #tpu.memory_space<vmem>>, vector<4x1xf32>
    tpu.vector_store %arg4[%c0_55, %c8_56], %89 {strides = array<i32>} : memref<4x9xf32, #tpu.memory_space<vmem>>, vector<4x1xf32>,
    return
  }
}

</mosaic_0001>

<bundles_post_ra>
// kernel: tpu_custom_call.1
= control target key start
LH: loop header
LB: loop body
LE: loop exit
PB: predicated region body
PF: predicated region fallthrough
CT: control target
= control target key end

     0   :  { %v1008_v2 = vmov 0.0|0.0   ;;  %vm1009_vm0 = vmmov 0   ;;  %v1010_v4 = vmov 0.0   ;;  %s1153_s0 = inlined_call_operand.vmem [shape: f32[4,16], index: 0, kind: input, shape index: {}]   ;;  %s1154_s1 = inlined_call_operand.vmem [shape: f32[80,8], index: 1, kind: input, shape index: {}]   ;;  %s1155_s2 = inlined_call_operand.vmem [shape: f32[32,4], index: 2, kind: input, shape index: {}]   ;;  %s1156_s3 = inlined_call_operand.vmem [shape: f32[32,4], index: 3, kind: input, shape index: {}]   ;;  %s1157_s4 = inlined_call_operand.hbm [shape: f32[4,9], index: 4, kind: output, shape index: {}]  }
   0x1   :  { %v19_v0 = vld [vmem:[%s1154_s1] sm:$0xff]  ;;  %v20_v1 = vld [vmem:[%s1154_s1 + $0x8] sm:$0xff]  ;;  %951 = vmatprep.subr.bf16.mxu0 %v1008_v2  ;;  %897 = vmatprep.mubr.msk.f32.mxu0 %vm1009_vm0, %v1010_v4  ;;  %v96_v5 = vld [vmem:[%s1154_s1 + $0x10] sm:$0xff] }
   0x2   :  { %v952_v3 = vpack.c.bf16 %v20_v1, %v19_v0  ;;  %v97_v6 = vld [vmem:[%s1154_s1 + $0x18] sm:$0xff]  ;;  %954 = vmatprep.subr.bf16.mxu1 %v1008_v2  ;;  %904 = vmatprep.mubr.msk.f32.mxu1 %vm1009_vm0, %v1010_v4 }
   0x3   :  { %v955_v7 = vpack.c.bf16 %v97_v6, %v96_v5 }
   0x4   :  { %9 = vsyncpa [#allocation3], 0  ;;  %953 = vmatpush3.bf16.msra.mxu0 %v952_v3  ;;  %v18_v8 = vld [vmem:[%s1153_s0] sm:$0xf]  ;;  %vm21_vm1 = vcmask 130048   ;;  %v249_v10 = vld [vmem:[%s1155_s2 + $0x8] sm:$0xff] }
   0x5   :  { %956 = vmatpush3.bf16.msra.mxu1 %v955_v7  ;;  %907 = vmatprep.subr.mxu0 %v1010_v4  ;;  %v169_v9 = vld [vmem:[%s1155_s2] sm:$0xff]  ;;  %vm175_vm2 = vcmask 64512   ;;  %vm335_vm3 = vcmask 1043456   ;;  %v482_v18 = vld [vmem:[%s1154_s1 + $0x48] sm:$0xf]  ;;  %v480_v21 = vld [vmem:[%s1154_s1 + $0x30] sm:$0xff] }
   0x6   :  { %912 = vmatprep.subr.mxu1 %v1010_v4  ;;  %v330_v15 = vld [vmem:[%s1154_s1 + $0x40] sm:$0xf]  ;;  %v329_v20 = vld [vmem:[%s1154_s1 + $0x28] sm:$0xff]  ;;  %v481_v22 = vld [vmem:[%s1154_s1 + $0x38] sm:$0xff]  ;;  %vm331_vm4 = vcmask 31744   ;;  %vm785_vm5 = vcmask 27648  }
   0x7   :  { %898 = vmatmul.mubr.msk.f32.vlgmr.msra.gmra.mrb[0].mxu0 %vm21_vm1, %v18_v8  ;;  %v328_v19 = vld [vmem:[%s1154_s1 + $0x20] sm:$0xff]  ;;  %v855_v23 = vld [vmem:[%s1155_s2 + $0x10] ss:$0 sm:$0xff]  ;;  %v961_v26 = vpack.c.bf16 %v481_v22, %v480_v21  ;;  %v857_v32 = vld [vmem:[%s1155_s2 + $0x18] ss:$0 sm:$0xff]  ;;  %vm835_vm6 = vcmask 60448  }
   0x8   :  { %905 = vmatmul.mubr.msk.f32.vlgmr.msra.gmra.mrb[0].mxu1 %vm21_vm1, %v18_v8  ;;  %908 = vmatpush3.msra.mxu0 %v169_v9  ;;  %v958_v25 = vpack.c.bf16 %v329_v20, %v328_v19  ;;  %v627_v31 = vld [vmem:[%s1156_s3] sm:$0xff]  ;;  %v706_v34 = vld [vmem:[%s1156_s3 + $0x8] sm:$0xff]  ;;  %v865_v46 = vld [vmem:[%s1156_s3 + $0x10] ss:$0 sm:$0xff]  ;;  %s1012_s24 = smov [#allocation2]   ;;  %vm837_vm7 = vcmask 68672  }
   0x9   :  { %909 = vmatprep.mubr.msk.f32.mxu0 %vm1009_vm0, %v1010_v4  ;;  %914 = vmatprep.mubr.msk.f32.mxu1 %vm1009_vm0, %v1010_v4  ;;  %v867_v47 = vld [vmem:[%s1156_s3 + $0x18] ss:$0 sm:$0xff]  ;;  %s1011_s3 = smov 4   ;;  %s845_s25 = sshll.u32 %s1012_s24, 4  ;;  %s846_s25 = int_to_ptr.vmem [resolvable:$true] %s845_s25 }
   0xa   :  { %917 = vmatprep.subr.mxu0 %v1010_v4  ;;  %913 = vmatpush3.msra.mxu1 %v249_v10  ;;  %s984_s26 = scalar_lea.vmem %s846_s25, 64  ;;  %p989_p1 = scmp.lt.s32.totalorder %s846_s25, %s846_s25 }
   0xb   :  { %929 = vmatprep.subr.mxu1 %v1010_v4  ;;  %p985_p0 = scmp.ne.s32.totalorder %s846_s25, %s984_s26  ;;  %p990_p2 = scmp.lt.s32.totalorder %s984_s26, %s984_s26 }
   0xd   :  { %p991_p3 = por %p990_p2, %p989_p1 }
   0xf   :  { %p992_p4 = pnand %p991_p3, %p985_p0 }
  0xda   :  { %v91_v11 = vpop.f32.mrb[0].mxu0 }
  0xdb   :  { %v95_v12 = vmax.f32 %v91_v11, 0.0  ;;  %v899_v13 = vpop.f32.mrb[1].mxu0  ;;  %v164_v14 = vpop.f32.mrb[0].mxu1 }
  0xdc   :  { %v168_v16 = vmax.f32 %v164_v14, 0.0  ;;  %v906_v17 = vpop.f32.mrb[1].mxu1 }
  0xdd   :  { %910 = vmatmul.mubr.msk.f32.vlgmr.msra.gmra.mrb[2].mxu0 %vm175_vm2, %v95_v12 }
  0xde   :  { %915 = vmatmul.mubr.msk.f32.vlgmr.msra.gmra.mrb[2].mxu1 %vm175_vm2, %v168_v16  ;;  %918 = vmatpush3.msk.msra.mxu0 %vm335_vm3, %v330_v15 }
  0xdf   :  { %919 = vmatprep.mubr.msk.f32.mxu0 %vm1009_vm0, %v1010_v4  ;;  %957 = vmatprep.subr.bf16.mxu0 %v1008_v2 }
  0xe0   :  { %931 = vmatprep.mubr.msk.f32.mxu1 %vm1009_vm0, %v1010_v4  ;;  %930 = vmatpush3.msk.msra.mxu1 %vm335_vm3, %v482_v18 }
  0xe1   :  { %960 = vmatprep.subr.bf16.mxu1 %v1008_v2 }
 0x1b0   :  { %v245_v24 = vpop.f32.mrb[2].mxu0 }
 0x1b1   :  { %v1100_v27 = vadd.f32 %v855_v23, %v245_v24  ;;  %v911_v28 = vpop.f32.mrb[3].mxu0  ;;  %v324_v29 = vpop.f32.mrb[2].mxu1 }
 0x1b2   :  { %v916_v30 = vpop.f32.mrb[3].mxu1  ;;  %v325_v33 = vadd.f32 %v857_v32, %v324_v29 }
 0x1b3   :  { %920 = vmatmul.mubr.msk.f32.vlgmr.msra.gmra.mrb[4].mxu0 %vm331_vm4, %v1100_v27  ;;  %932 = vmatmul.mubr.msk.f32.vlgmr.msra.gmra.mrb[4].mxu1 %vm331_vm4, %v1100_v27  ;;  %v811_v42 = vmul.f32 2.0, %v1100_v27  ;;  %v810_v10 = vadd.f32 0.6931472, %v1100_v27 }
 0x1b4   :  { %959 = vmatpush3.bf16.msra.mxu0 %v958_v25  ;;  %962 = vmatpush3.bf16.msra.mxu1 %v961_v26  ;;  %v786_v35 = vsel %vm785_vm5, %v325_v33, 0.0 }
 0x1b5   :  { %926 = vmatprep.mubr.msk.f32.mxu0 %vm1009_vm0, %v1010_v4  ;;  %938 = vmatprep.mubr.msk.f32.mxu1 %vm1009_vm0, %v1010_v4  ;;  %v813_v43 = vand.u32 2147483647, %v811_v42  ;;  %v812_v3 = vmax.f32 %v811_v42, 0.0 }
 0x1b6   :  { %941 = vmatprep.subr.mxu0 %v1010_v4  ;;  %946 = vmatprep.subr.mxu1 %v1010_v4 }
 0x1b7   :  { %787 = vadd.xlane.f32.xlu0 %v786_v35  ;;  %v814_v44 = vsub.f32 0.0, %v813_v43 }
 0x1b9   :  { %v815_v45 = vmul.f32 1.442695, %v814_v44 }
 0x1bb   :  { %927 = vmatmul.mubr.msk.f32.vlgmr.msra.gmra.mrb[4].mxu0 %vm21_vm1, %v18_v8  ;;  %939 = vmatmul.mubr.msk.f32.vlgmr.msra.gmra.mrb[4].mxu1 %vm21_vm1, %v18_v8  ;;  %972 = vpow2.f32 %v815_v45 }
 0x1bc   :  { %942 = vmatpush3.msra.mxu0 %v627_v31  ;;  %943 = vmatprep.mubr.msk.f32.mxu0 %vm1009_vm0, %v1010_v4 }
 0x1bd   :  { %948 = vmatprep.mubr.msk.f32.mxu1 %vm1009_vm0, %v1010_v4  ;;  %947 = vmatpush3.msra.mxu1 %v706_v34 }
 0x1c5   :  { %v973_v59 = vpop.eup %972 }
 0x1c6   :  { %v817_v61 = vadd.f32 1.0, %v973_v59 }
 0x244   :  { %v788_v17 = vpop.xlane.xlu0 %787 }
 0x245   :  { %v789_v21 = vsub.f32 -7.351508, %v788_v17 }
 0x28e   :  { %v475_v36 = vpop.f32.mrb[4].mxu0  ;;  %v622_v37 = vpop.f32.mrb[4].mxu1 }
 0x28f   :  { %v479_v38 = vmax.f32 %v475_v36, 0.0  ;;  %v626_v39 = vmax.f32 %v622_v37, 0.0  ;;  %v928_v40 = vpop.f32.mrb[5].mxu0  ;;  %v940_v41 = vpop.f32.mrb[5].mxu1 }
 0x291   :  { %944 = vmatmul.mubr.msk.f32.vlgmr.msra.gmra.mrb[6].mxu0 %vm175_vm2, %v479_v38  ;;  %949 = vmatmul.mubr.msk.f32.vlgmr.msra.gmra.mrb[6].mxu1 %vm175_vm2, %v626_v39 }
 0x364   :  { %v702_v48 = vpop.f32.mrb[6].mxu0  ;;  %v781_v49 = vpop.f32.mrb[6].mxu1 }
 0x365   :  { %v703_v50 = vadd.f32 %v865_v46, %v702_v48  ;;  %v782_v51 = vadd.f32 %v867_v47, %v781_v49  ;;  %v945_v52 = vpop.f32.mrb[7].mxu0  ;;  %v950_v53 = vpop.f32.mrb[7].mxu1 }
 0x367   :  { %v795_v54 = vmul.f32 2.0, %v703_v50  ;;  %974 = vtanh.f32 %v703_v50  ;;  %v790_v55 = vsel %vm785_vm5, %v782_v51, 0.0  ;;  %v794_v8 = vadd.f32 0.6931472, %v703_v50 }
 0x368   :  { %791 = vadd.xlane.f32.xlu0 %v790_v55 }
 0x369   :  { %v797_v56 = vand.u32 2147483647, %v795_v54  ;;  %v796_v5 = vmax.f32 %v795_v54, 0.0 }
 0x36b   :  { %v798_v57 = vsub.f32 0.0, %v797_v56 }
 0x36d   :  { %v799_v58 = vmul.f32 1.442695, %v798_v57 }
 0x36f   :  { %976 = vpow2.f32 %v799_v58 }
 0x370   :  { %978 = vtanh.f32 %v1100_v27 }
 0x371   :  { %v975_v60 = vpop.eup %974  ;;  %980 = vlog2.f32 %v817_v61 }
 0x372   :  { %829 = vst.msk [vmem:[#allocation2] sm:$0xf] %vm785_vm5, %v975_v60 }
 0x379   :  { %v977_v62 = vpop.eup %976 }
 0x37a   :  { %v801_v63 = vadd.f32 1.0, %v977_v62  ;;  %v979_v0 = vpop.eup %978 }
 0x37b   :  { %v981_v1 = vpop.eup %980 }
 0x37c   :  { %982 = vlog2.f32 %v801_v63  ;;  %v819_v2 = vmul.f32 0.6931472, %v981_v1 }
 0x37e   :  { %832 = vrot.lane.b32.xlu0 %v979_v0, %s1011_s3  ;;  %v820_v7 = vadd.f32 %v819_v2, %v812_v3 }
 0x380   :  { %v821_v12 = vsub.f32 %v810_v10, %v820_v7 }
 0x382   :  { %v822_v15 = vmul.f32 2.0, %v821_v12 }
 0x384   :  { %v823_v16 = vsel %vm785_vm5, %v822_v15, 0.0 }
 0x386   :  { %v983_v4 = vpop.eup %982 }
 0x387   :  { %v803_v6 = vmul.f32 0.6931472, %v983_v4 }
 0x389   :  { %v804_v9 = vadd.f32 %v803_v6, %v796_v5 }
 0x38b   :  { %v805_v11 = vsub.f32 %v794_v8, %v804_v9 }
 0x38d   :  { %v806_v13 = vmul.f32 2.0, %v805_v11 }
 0x38f   :  { %v807_v14 = vsel %vm785_vm5, %v806_v13, 0.0 }
 0x390   :  { %808 = vadd.xlane.f32.xlu1 %v807_v14 }
 0x394   :  { %824 = vadd.xlane.f32.xlu1 %v823_v16 }
 0x3f5   :  { %v792_v18 = vpop.xlane.xlu0 %791 }
 0x3f6   :  { %v793_v23 = vsub.f32 %v789_v21, %v792_v18 }
 0x3f9   :  { %v833_v19 = vpop.permute.xlu0 %832 }
 0x3fa   :  { %836 = vst.msk [vmem:[#allocation2] sm:$0xf] %vm835_vm6, %v833_v19 }
 0x41d   :  { %v809_v20 = vpop.xlane.xlu1 %808 }
 0x421   :  { %v825_v22 = vpop.xlane.xlu1 %824 }
 0x422   :  { %v826_v24 = vadd.f32 %v825_v22, %v809_v20 }
 0x424   :  { %v827_v25 = vsub.f32 %v793_v23, %v826_v24 }
 0x426   :  { %838 = vst.msk [vmem:[#allocation2] sm:$0xf] %vm837_vm7, %v827_v25 }
 0x427   :  { %995 = shalt.err (!%p992_p4)
}
 0x428   :  { %s996_s28 = scalar_lea.hbm %s1157_s4, 64 }
 0x429   :  { %p997_p5 = scmp.ne.s32.totalorder %s1157_s4, %s996_s28  ;;  %p1000_p6 = scmp.lt.u32.totalorder %s996_s28, %s1157_s4 }
 0x42b   :  { %p1002_p7 = pnand %p1000_p6, %p997_p5 }
 0x42d   :  { %1005 = shalt.err (!%p1002_p7)
}
 0x42e   :  { %848 = dma.vmem_to_hbm [thread:$0]  %s846_s25, 64, %s1157_s4, [#allocation3]  }
 0x42f   :  { %1006 = dma.done.wait [#allocation3], 64  }
 0x430   :  { %1007 = vsyncadd [#allocation3], 4294967232 }
 0x431   :  { %852 = vsyncpa [#allocation3], 1 }

</bundles_post_ra>
